<compile_context>
chip_gen: v5e
topology: v5e:2x2
jax: 0.10.0
libtpu: 0.0.40
codegen_flags: <defaults>
</compile_context>

<pallas_src>
import jax
import jax.numpy as jnp
from jax.experimental import pallas as pl
from jax.experimental.pallas import tpu as pltpu

N_POS = 30
LEAKY_SLOPE = 0.01  # nn.LeakyReLU default


# --------------------------------------------------------------------------
# Pallas kernel: biaffine score materialization, one (m-tile, batch) step.
# --------------------------------------------------------------------------
def b2_kernel(hterm_ref, tterm_ref, sterm_ref, out_ref):
    """out[0, k, m, n] = hterm[k, m, 0] + tterm[k, 0, n] + sterm[k, m, n].

    hterm_ref : (1, K, TM, 1) head term of this batch element / m-tile
    tterm_ref : (1, K, 1, S)  tail term of this batch element
    sterm_ref : (K, TM, S)    batch-invariant size-embedding term (+ ones bias)
    out_ref   : (1, K, TM, S)
    """
    out_ref[0] = hterm_ref[0] + tterm_ref[0] + sterm_ref[...]


def _pick_tile_m(S, K, block_budget_bytes=40 * 1024 * 1024):
    """Largest m-tile whose double-buffered out+sterm blocks fit the budget.

    tile_m is either full S or a multiple-of-128 divisor of S so that every
    block (including the (1, K, tile_m, 1) head-term block) is lane/sublane
    aligned or full-extent.
    """
    def fits(tm):
        # 2x out block + 2x sterm block, each K * tm * S f32.
        return 4 * K * tm * S * 4 <= block_budget_bytes

    if fits(S):
        return S
    cands = [tm for tm in range(128, S, 128) if S % tm == 0]
    for tm in reversed(cands):
        if fits(tm):
            return tm
    return cands[0] if cands else S


def b2_pallas(hterm, tterm, sterm):
    B, K, S, _ = hterm.shape
    tile_m = _pick_tile_m(S, K)
    # m-tiles outer, batch inner: the sterm block index is constant over the
    # inner batch loop, so it is fetched once per m-tile (not once per batch).
    grid = (S // tile_m, B)

    block_bytes = 4 * K * tile_m * S * 4          # 2x out + 2x sterm buffers
    vmem_limit = int(min(64 * 1024 * 1024,
                         max(32 * 1024 * 1024, block_bytes + (8 << 20))))

    cost = pl.CostEstimate(
        flops=2 * B * K * S * S,                   # two adds per output element
        transcendentals=0,
        bytes_accessed=(B * K * S * S * 4          # output write
                        + K * S * S * 4            # sterm read (once per m-tile)
                        + 2 * B * K * S * 4),      # hterm + tterm reads
    )

    return pl.pallas_call(
        b2_kernel,
        out_shape=jax.ShapeDtypeStruct((B, K, S, S), jnp.float32),
        grid=grid,
        in_specs=[
            pl.BlockSpec((1, K, tile_m, 1), lambda mt, b: (b, 0, mt, 0)),  # head term
            pl.BlockSpec((1, K, 1, S), lambda mt, b: (b, 0, 0, 0)),        # tail term
            pl.BlockSpec((K, tile_m, S), lambda mt, b: (0, mt, 0)),        # size term
        ],
        out_specs=pl.BlockSpec((1, K, tile_m, S), lambda mt, b: (b, 0, mt, 0)),
        compiler_params=pltpu.CompilerParams(
            dimension_semantics=("parallel", "parallel"),
            vmem_limit_bytes=vmem_limit),
        cost_estimate=cost,
    )(hterm, tterm, sterm)


# --------------------------------------------------------------------------
# Bidirectional LSTM (plain JAX glue).
# TODO(synk): the LSTM time recurrence stays in lax.scan — the sequential
# dependency at these sizes is not a tiling-friendly Pallas hot path.
# --------------------------------------------------------------------------
def _lstm_dir(x, p, reverse):
    B, S, D = x.shape
    Hh = p["w_hh"].shape[1]

    def cell(carry, x_t):
        h, c = carry
        gates = x_t @ p["w_ih"].T + p["b_ih"] + h @ p["w_hh"].T + p["b_hh"]
        i, f, g, o = jnp.split(gates, 4, axis=-1)
        i = jax.nn.sigmoid(i)
        f = jax.nn.sigmoid(f)
        g = jnp.tanh(g)
        o = jax.nn.sigmoid(o)
        c = f * c + i * g
        h = o * jnp.tanh(c)
        return (h, c), h

    xs = jnp.swapaxes(x, 0, 1)                # (S, B, D)
    if reverse:
        xs = xs[::-1]
    h0 = jnp.zeros((B, Hh), jnp.float32)
    c0 = jnp.zeros((B, Hh), jnp.float32)
    _, hs = jax.lax.scan(cell, (h0, c0), xs)
    if reverse:
        hs = hs[::-1]
    return jnp.swapaxes(hs, 0, 1)             # (B, S, Hh)


def bilstm(x, params):
    fwd = _lstm_dir(x, params["lstm_fwd"], reverse=False)
    bwd = _lstm_dir(x, params["lstm_bwd"], reverse=True)
    return jnp.concatenate([fwd, bwd], axis=-1)   # (B, S, mid_dim)


def span_size_ids(S, n_pos=N_POS):
    a = jnp.arange(S)
    ids = a[None, :] - a[:, None]                             # ids[i, j] = j - i
    return jnp.clip(ids, -(n_pos // 2), n_pos // 2 - 1) + n_pos // 2


# --------------------------------------------------------------------------
# Parameter init (deterministic, synthetic).
# --------------------------------------------------------------------------
def init_params(key, in_dim, mid_dim, out_dim, size_embed_dim):
    H = mid_dim // 2
    ks = jax.random.split(key, 14)

    def uni(k, shape, scale):
        return jax.random.uniform(k, shape, jnp.float32, -scale, scale)

    sl = 1.0 / float(H) ** 0.5
    sm = 1.0 / float(mid_dim) ** 0.5
    h_total = 2 * mid_dim + size_embed_dim + 2
    xavier_std = (2.0 / (out_dim + h_total)) ** 0.5
    return dict(
        lstm_fwd=dict(w_ih=uni(ks[0], (4 * H, in_dim), sl),
                      w_hh=uni(ks[1], (4 * H, H), sl),
                      b_ih=uni(ks[2], (4 * H,), sl),
                      b_hh=uni(ks[3], (4 * H,), sl)),
        lstm_bwd=dict(w_ih=uni(ks[4], (4 * H, in_dim), sl),
                      w_hh=uni(ks[5], (4 * H, H), sl),
                      b_ih=uni(ks[6], (4 * H,), sl),
                      b_hh=uni(ks[7], (4 * H,), sl)),
        head_w=uni(ks[8], (mid_dim, mid_dim), sm),
        head_b=uni(ks[9], (mid_dim,), sm),
        tail_w=uni(ks[10], (mid_dim, mid_dim), sm),
        tail_b=uni(ks[11], (mid_dim,), sm),
        emb_table=jax.random.normal(ks[12], (N_POS, size_embed_dim), jnp.float32),
        W=xavier_std * jax.random.normal(ks[13], (out_dim, h_total), jnp.float32),
    )


# --------------------------------------------------------------------------
# Full forward (glue + Pallas hot path) and a pure-JAX reference.
# --------------------------------------------------------------------------
def b2_forward(x, params):
    lstm_out = bilstm(x, params)                                # (B, S, M)
    B, S, M = lstm_out.shape
    W = params["W"]                                             # (K, 2M + 2 + E)
    W_head = W[:, :M]                                           # (K, M)
    w_head1 = W[:, M]                                           # (K,)
    W_tail = W[:, M + 1:2 * M + 1]                              # (K, M)
    w_tail1 = W[:, 2 * M + 1]                                   # (K,)
    W_size = W[:, 2 * M + 2:]                                   # (K, E)

    # Head / tail MLP + per-segment biaffine contraction: two tiny XLA matmuls
    # (hoisted out of the kernel per perf review; the Pallas kernel streams the
    # dominant B*K*S*S output).
    head = jax.nn.leaky_relu(lstm_out @ params["head_w"].T + params["head_b"],
                             LEAKY_SLOPE)                        # (B, S, M)
    tail = jax.nn.leaky_relu(lstm_out @ params["tail_w"].T + params["tail_b"],
                             LEAKY_SLOPE)                        # (B, S, M)
    hterm = jnp.einsum("bsm,km->bks", head, W_head)[..., None]          # (B,K,S,1)
    tterm = jnp.einsum("bsm,km->bks", tail, W_tail)[:, :, None, :]      # (B,K,1,S)

    # Batch-invariant size term, pre-contracted from the 30-entry table, with
    # the two "ones"-column biases folded in.
    table_k = params["emb_table"] @ W_size.T                    # (N_POS, K)
    sterm = jnp.transpose(table_k[span_size_ids(S)], (2, 0, 1)) # (K, S, S)
    sterm = sterm + (w_head1 + w_tail1)[:, None, None]

    return b2_pallas(hterm, tterm, sterm)


def b2_reference(x, params):
    lstm_out = bilstm(x, params)
    B, S, M = lstm_out.shape
    head = jax.nn.leaky_relu(lstm_out @ params["head_w"].T + params["head_b"], LEAKY_SLOPE)
    tail = jax.nn.leaky_relu(lstm_out @ params["tail_w"].T + params["tail_b"], LEAKY_SLOPE)
    ones = jnp.ones(head.shape[:-1] + (1,), head.dtype)
    head = jnp.concatenate([head, ones], -1)
    tail = jnp.concatenate([tail, ones], -1)
    affined = jnp.concatenate([
        jnp.broadcast_to(head[:, :, None, :], (B, S, S, M + 1)),
        jnp.broadcast_to(tail[:, None, :, :], (B, S, S, M + 1)),
    ], -1)
    semb = params["emb_table"][span_size_ids(S)]
    affined = jnp.concatenate(
        [affined, jnp.broadcast_to(semb[None], (B, S, S, semb.shape[-1]))], -1)
    return jnp.einsum("bmnh,kh->bkmn", affined, params["W"])


if __name__ == "__main__":
    B, S = 2, 8
    in_dim, mid_dim, out_dim, size_embed_dim = 16, 32, 4, 8

    key = jax.random.PRNGKey(0)
    pkey, xkey = jax.random.split(key)
    params = init_params(pkey, in_dim, mid_dim, out_dim, size_embed_dim)
    x = jax.random.normal(xkey, (B, S, in_dim), jnp.float32)

    out = b2_forward(x, params)
    out = jax.block_until_ready(out)

    ref = b2_reference(x, params)
    assert out.shape == (B, out_dim, S, S), out.shape
    assert jnp.allclose(out, ref, rtol=1e-4, atol=1e-4), float(jnp.max(jnp.abs(out - ref)))
    print("KERNEL_OK")
</pallas_src>

<mosaic_0001>
module attributes {stable_mosaic.version = 11 : i64} {
  func.func @b2_kernel(%arg0: i32, %arg1: i32, %arg2: memref<1x4x8x1xf32, #tpu.memory_space<vmem>>, %arg3: memref<1x4x1x8xf32, #tpu.memory_space<vmem>>, %arg4: memref<4x8x8xf32, #tpu.memory_space<vmem>>, %arg5: memref<1x4x8x8xf32, #tpu.memory_space<vmem>>) attributes {dimension_semantics = [#tpu.dimension_semantics<parallel>, #tpu.dimension_semantics<parallel>], iteration_bounds = array<i64: 1, 2>, scalar_prefetch = 0 : i64, scratch_operands = 0 : i64, tpu.core_type = #tpu.core_type<tc>, window_params = [{transform_indices = @transform_0, window_bounds = array<i64: 1, 4, 8, 1>}, {transform_indices = @transform_1, window_bounds = array<i64: 1, 4, 1, 8>}, {transform_indices = @transform_2, window_bounds = array<i64: 4, 8, 8>}, {transform_indices = @transform_3, window_bounds = array<i64: 1, 4, 8, 8>}]} {
    %c0 = arith.constant 0 : index
    %c0_0 = arith.constant 0 : index
    %c0_1 = arith.constant 0 : index
    %c0_2 = arith.constant 0 : index
    %0 = vector.load %arg2[%c0, %c0_0, %c0_1, %c0_2] : memref<1x4x8x1xf32, #tpu.memory_space<vmem>>, vector<1x4x8x1xf32>
    %1 = vector.shape_cast %0 : vector<1x4x8x1xf32> to vector<4x8x1xf32>
    %c0_3 = arith.constant 0 : index
    %c0_4 = arith.constant 0 : index
    %c0_5 = arith.constant 0 : index
    %c0_6 = arith.constant 0 : index
    %2 = vector.load %arg3[%c0_3, %c0_4, %c0_5, %c0_6] : memref<1x4x1x8xf32, #tpu.memory_space<vmem>>, vector<1x4x1x8xf32>
    %3 = vector.shape_cast %2 : vector<1x4x1x8xf32> to vector<4x1x8xf32>
    %4 = vector.broadcast %1 : vector<4x8x1xf32> to vector<4x8x8xf32>
    %5 = vector.broadcast %3 : vector<4x1x8xf32> to vector<4x8x8xf32>
    %6 = arith.addf %4, %5 : vector<4x8x8xf32>
    %c0_7 = arith.constant 0 : index
    %c0_8 = arith.constant 0 : index
    %c0_9 = arith.constant 0 : index
    %7 = vector.load %arg4[%c0_7, %c0_8, %c0_9] : memref<4x8x8xf32, #tpu.memory_space<vmem>>, vector<4x8x8xf32>
    %8 = arith.addf %6, %7 : vector<4x8x8xf32>
    %c0_10 = arith.constant 0 : index
    %c0_11 = arith.constant 0 : index
    %c0_12 = arith.constant 0 : index
    %c0_13 = arith.constant 0 : index
    %9 = vector.load %arg5[%c0_10, %c0_11, %c0_12, %c0_13] : memref<1x4x8x8xf32, #tpu.memory_space<vmem>>, vector<1x4x8x8xf32>
    %10 = vector.shape_cast %9 : vector<1x4x8x8xf32> to vector<4x8x8xf32>
    %11 = vector.shape_cast %8 : vector<4x8x8xf32> to vector<1x4x8x8xf32>
    tpu.vector_store %arg5[%c0_10, %c0_11, %c0_12, %c0_13], %11 {strides = array<i32>} : memref<1x4x8x8xf32, #tpu.memory_space<vmem>>, vector<1x4x8x8xf32>,
    return
  }
  func.func @transform_0(%arg0: i32, %arg1: i32) -> (i32, i32, i32, i32) {
    %c0_i32 = arith.constant 0 : i32
    %c0_i32_0 = arith.constant 0 : i32
    %c0_i32_1 = arith.constant 0 : i32
    return %arg1, %c0_i32, %arg0, %c0_i32_0 : i32, i32, i32, i32
  }
  func.func @transform_1(%arg0: i32, %arg1: i32) -> (i32, i32, i32, i32) {
    %c0_i32 = arith.constant 0 : i32
    %c0_i32_0 = arith.constant 0 : i32
    %c0_i32_1 = arith.constant 0 : i32
    %c0_i32_2 = arith.constant 0 : i32
    return %arg1, %c0_i32, %c0_i32_0, %c0_i32_1 : i32, i32, i32, i32
  }
  func.func @transform_2(%arg0: i32, %arg1: i32) -> (i32, i32, i32) {
    %c0_i32 = arith.constant 0 : i32
    %c0_i32_0 = arith.constant 0 : i32
    %c0_i32_1 = arith.constant 0 : i32
    return %c0_i32, %arg0, %c0_i32_0 : i32, i32, i32
  }
  func.func @transform_3(%arg0: i32, %arg1: i32) -> (i32, i32, i32, i32) {
    %c0_i32 = arith.constant 0 : i32
    %c0_i32_0 = arith.constant 0 : i32
    %c0_i32_1 = arith.constant 0 : i32
    return %arg1, %c0_i32, %arg0, %c0_i32_0 : i32, i32, i32, i32
  }
}

</mosaic_0001>

<bundles_post_ra>
// kernel: tpu_custom_call.1
= control target key start
LH: loop header
LB: loop body
LE: loop exit
PB: predicated region body
PF: predicated region fallthrough
CT: control target
= control target key end

     0   :  { %8 = vsyncpa [#allocation3], 0  ;;  %s711_s0 = inlined_call_operand.vmem [shape: f32[2,4,8,1], index: 0, kind: input, shape index: {}]   ;;  %s712_s1 = inlined_call_operand.vmem [shape: f32[2,4,1,8], index: 1, kind: input, shape index: {}]   ;;  %s713_s2 = inlined_call_operand.vmem [shape: f32[4,8,8], index: 2, kind: input, shape index: {}]   ;;  %s714_s3 = inlined_call_operand.hbm [shape: f32[2,4,8,8], index: 3, kind: output, shape index: {}]  }
   0x1   :  { %10 = vsyncpa [#allocation3 + $0x1], 0  ;;  %s591_s12 = smov 0   ;;  %s593_s13 = smov 0  }
   0x2   :  { %s595_s14 = smov 0   ;;  %s597_s15 = smov 0  }
   0x3   :  { %s599_s16 = smov 0   ;;  %s601_s17 = smov 0  }
   0x4 LB: > { %s407_s18 = sadd.s32 4294967295, %s566_s17   ;;  %s408_s19 = sadd.s32 4294967294, %s566_s17   ;;  %s566_s17 = sphi %s601_s17, %s16_s17   ;;  %s562_s16 = sphi %s599_s16, %s721_s16   ;;  %s558_s15 = sphi %s597_s15, %s720_s15   ;;  %s554_s14 = sphi %s595_s14, %s719_s14   ;;  %s550_s13 = sphi %s593_s13, %s718_s13   ;;  %s546_s12 = sphi %s591_s12, %s717_s12  }
   0x5   : > { %s25_s20 = sadd.s32 1, %s562_s16  ;;  %s117_s21 = sadd.s32 1, %s554_s14 }
   0x6   : > { %p26_p0 = scmp.ge.s32.totalorder %s25_s20, 2  ;;  %p127_p1 = scmp.ne.s32.totalorder %s554_s14, %s550_s13 }
   0x7   : > { %p128_p2 = scmp.eq.s32.totalorder %s407_s18, 1  ;;  %p133_p3 = scmp.ne.s32.totalorder %s550_s13, %s546_s12 }
   0x8   : > { %s723_s20 = smov (%p26_p0, %s25_s20), 0  ;;  %p134_p5 = scmp.eq.s32.totalorder %s408_s19, 1 }
   0x9   : > { %p631_p4 = por %p128_p2, %p127_p1  ;;  %s112_s23 = ssub.s32 %s562_s16, %s723_s20 }
   0xa   : > { %p412_p6 = scmp.ge.s32.totalorder %s566_s17, 1  ;;  %p115_p7 = scmp.eq.s32.totalorder %s112_s23, 0 }
   0xb   : > { %p638_p8 = por %p134_p5, %p133_p3  ;;  %p177_p9 = scmp.lt.s32.totalorder %s566_s17, 3 }
   0xc   : > { %s644_s25 = scalar_select %p115_p7, %s554_s14, %s117_s21  }
   0xd   : > { %p178_p10 = pnand %p412_p6, %p177_p9 }
   0xe   : > { %p212_p11 = scmp.lt.s32.totalorder (!%p178_p10), %s558_s15, 1  ;;  %s209_s8 = sand.u32 (!%p178_p10), 1, %s550_s13  }
   0xf   : > { %181 = sbr.rel (%p178_p10) target bundleno = 157 (0x9d), region = 32  ;;  %s413_s9 = sshll.u32 (!%p178_p10), %s209_s8, 5 }
  0x10   : > { %s423_s21 = sshll.u32 (!%p178_p10), %s558_s15, 5  ;;  %s211_s23 = scalar_lea.vmem (!%p178_p10), [#allocation2], %s413_s9 }
  0x11   : > { %s299_s29 = sshll.u32 (!%p178_p10), %s211_s23, 4  ;;  %s508_s19 = scalar_lea.hbm (!%p178_p10), %s714_s3, 64  ;;  %s300_s29 = int_to_ptr.vmem [resolvable:$true] %s299_s29 }
  0x14   : > { %v568_v0 = vmov 0   ;;  %s213_s26 = scalar_select %p212_p11, %s558_s15, 1  ;;  %v274_v7 = vld [vmem:[%s713_s2 + $0x10] sm:$0xff]  ;;  %v272_v9 = vld [vmem:[%s713_s2] sm:$0xff]  ;;  %vm280_vm0 = vcmask 64512   ;;  %v275_v17 = vld [vmem:[%s713_s2 + $0x18] sm:$0xff] }
  0x15   : > { %483 = vset.pattern.permute.xlu1 %v568_v0  ;;  %482 = vset.pattern.permute.xlu0 %v568_v0  ;;  %v273_v19 = vld [vmem:[%s713_s2 + $0x8] sm:$0xff] }
  0x16   : > { %s422_s27 = sshll.u32 %s213_s26, 5  ;;  %s416_s28 = sshll.u32 %s213_s26, 2 }
  0x17   : > { %s219_s4 = scalar_lea.vmem %s711_s0, %s422_s27  ;;  %s223_s7 = scalar_lea.vmem %s712_s1, %s416_s28 }
  0x18   : > { %v230_v1 = vld [vmem:[%s219_s4 + $0x10] sm:$0xff]  ;;  %v228_v2 = vld [vmem:[%s219_s4] sm:$0xff]  ;;  %v231_v3 = vld [vmem:[%s219_s4 + $0x18] sm:$0xff]  ;;  %s298_s28 = scalar_lea.hbm %s714_s3, %s423_s21 }
  0x19   : > { %248 = vperm.xlu1 %483, %v230_v1   ;;  %238 = vperm.xlu0 %482, %v228_v2   ;;  %v229_v4 = vld [vmem:[%s219_s4 + $0x8] sm:$0xff]  ;;  %v484_v5 = vld [vmem:[%s223_s7 + $0x2] ss:$0 sm:$0xff]  ;;  %v485_v6 = vld [vmem:[%s223_s7] ss:$0 sm:$0xff]  ;;  %s301_s6 = sshll.u32 %s298_s28, 4  ;;  %s302_s6 = int_to_ptr.hbm [resolvable:$true] %s301_s6 }
  0x1a   : > { %v486_v15 = vld [vmem:[%s223_s7 + $0x3] ss:$0 sm:$0xff]  ;;  %v487_v16 = vld [vmem:[%s223_s7 + $0x1] ss:$0 sm:$0xff]  ;;  %s286_s7 = scalar_lea.sflag [#allocation3], %s209_s8  ;;  %s502_s9 = sshra.s32 %s302_s6, 4  ;;  %s503_s9 = int_to_ptr.hbm [resolvable:$true] %s502_s9 }
  0x1b   : > { %s504_s10 = scalar_lea.hbm %s503_s9, 32  ;;  %p509_p1 = scmp.lt.s32.totalorder %s503_s9, %s714_s3 }
  0x1c   : > { %p505_p12 = scmp.ne.s32.totalorder %s503_s9, %s504_s10  ;;  %p510_p2 = scmp.lt.s32.totalorder %s508_s19, %s504_s10 }
  0x1e   : > { %p506_p13 = pnand %p505_p12, %p631_p4  ;;  %p511_p3 = por %p510_p2, %p509_p1 }
  0x20   : > { %p507_p0 = pneg %p506_p13 }
  0x21   : > { %253 = vperm.xlu1 %483, %v231_v3   ;;  %243 = vperm.xlu0 %482, %v229_v4  }
  0x22   : > { %p512_p5 = pnand %p511_p3, %p507_p0 }
  0x8b   : > { %v249_v8 = vpop.permute.xlu1 %248  ;;  %v239_v10 = vpop.permute.xlu0 %238 }
  0x8c   : > { %v270_v11 = vadd.f32 %v484_v5, %v249_v8  ;;  %v268_v12 = vadd.f32 %v485_v6, %v239_v10 }
  0x8e   : > { %v278_v13 = vadd.f32 %v274_v7, %v270_v11  ;;  %v276_v14 = vadd.f32 %v272_v9, %v268_v12 }
  0x90   : > { %283 = vst.msk [vmem:[%s211_s23 + $0x10] sm:$0xff] %vm280_vm0, %v278_v13 }
  0x91   : > { %281 = vst.msk [vmem:[%s211_s23] sm:$0xff] %vm280_vm0, %v276_v14 }
  0x93   : > { %v254_v18 = vpop.permute.xlu1 %253  ;;  %v244_v20 = vpop.permute.xlu0 %243 }
  0x94   : > { %v271_v21 = vadd.f32 %v486_v15, %v254_v18  ;;  %v269_v22 = vadd.f32 %v487_v16, %v244_v20 }
  0x96   : > { %v279_v23 = vadd.f32 %v275_v17, %v271_v21  ;;  %v277_v24 = vadd.f32 %v273_v19, %v269_v22 }
  0x98   : > { %284 = vst.msk [vmem:[%s211_s23 + $0x18] sm:$0xff] %vm280_vm0, %v279_v23 }
  0x99   : > { %282 = vst.msk [vmem:[%s211_s23 + $0x8] sm:$0xff] %vm280_vm0, %v277_v24 }
  0x9a   : > { %515 = shalt.err (!%p512_p5)
}
  0x9b   : > { %s569_s8 = smov 128   ;;  %s570_s23 = smov 8  }
  0x9c   : > { %424 = dma.vmem_to_hbm [thread:$0]  (%p631_p4), %s300_s29, 512, %s302_s6, %s286_s7, %s569_s8, %s569_s8, %s570_s23  }
  0x9d PF: > { %p430_p6 = scmp.ge.s32.totalorder %s566_s17, 2  ;;  %s316_s27 = sand.u32 1, %s546_s12  }
  0x9e   : > { %s317_s28 = scalar_lea.sflag [#allocation3], %s316_s27 }
  0x9f   : > { %p427_p7 = pnand %p430_p6, %p638_p8 }
  0xa1   : > { %p428_p9 = pneg %p427_p7 }
  0xa3   : > { %541 = dma.done.wait (%p428_p9), %s317_s28, 512  }
  0xa4   : > { %543 = vsyncadd (%p428_p9), %s317_s28, 4294966784  ;;  %s16_s17 = sadd.s32 1, %s566_s17   ;;  %s717_s12 = smov %s550_s13 }
  0xa5   : > { %p13_p10 = scmp.ge.s32.totalorder %s16_s17, 4   ;;  %s718_s13 = smov %s554_s14 }
  0xa6   : > { %s719_s14 = smov %s644_s25  ;;  %s720_s15 = smov %s562_s16 }
  0xa7   : > { %s721_s16 = smov %s723_s20  ;;  %15 = sbr.rel (!%p13_p10) target bundleno = 4 (0x4), region = 73 }
  0xac   :  { %323 = vsyncpa [#allocation3], 1 }
  0xad   :  { %325 = vsyncpa [#allocation3 + $0x1], 1 }

</bundles_post_ra>
